<compile_context>
chip_gen: v7x
topology: tpu7x:2x2x1
jax: 0.10.0
libtpu: 0.0.40
codegen_flags: <defaults>
</compile_context>

<pallas_src>
import functools

import jax
import jax.numpy as jnp
from jax.experimental import pallas as pl
from jax.experimental.pallas import tpu as pltpu


def _round_up(n: int, m: int) -> int:
    return ((n + m - 1) // m) * m


def actor_kernel(x_ref, w_ref, b_ref, o_ref, *, d_in, d_h, d_out):
    # One batch tile per grid step; weights/biases are VMEM-resident slabs that
    # we slice with static (128-aligned) offsets -> zero runtime slicing cost.
    x = x_ref[...]                                   # (TB, d_in)
    w1 = w_ref[0:d_in, 0:d_h]                        # (d_in, d_h)
    w2 = w_ref[d_in:d_in + d_h, 0:d_h]               # (d_h, d_h)
    w3 = w_ref[d_in + d_h:d_in + 2 * d_h, 0:d_out]   # (d_h, d_out)
    b1 = b_ref[0:1, 0:d_h]
    b2 = b_ref[1:2, 0:d_h]
    b3 = b_ref[2:3, 0:d_out]

    h = jnp.maximum(jnp.dot(x, w1, preferred_element_type=jnp.float32) + b1, 0.0)
    h = jnp.maximum(jnp.dot(h, w2, preferred_element_type=jnp.float32) + b2, 0.0)
    y = jnp.dot(h, w3, preferred_element_type=jnp.float32) + b3
    o_ref[...] = (jnp.tanh(y) * 3.0).astype(o_ref.dtype)


def pack_params(w1, b1, w2, b2, w3, b3):
    """Pack the 3 layers into one lane-padded weight slab + one bias slab.

    Built once at init; padded lanes/rows are zero so they contribute nothing
    to the matmuls (ReLU(0 + 0) = 0 keeps padded lanes zero through the net).
    """
    d_in, d_h = int(w1.shape[0]), int(w1.shape[1])
    d_out = int(w3.shape[1])
    d_in_p = _round_up(d_in, 128)
    d_h_p = _round_up(d_h, 128)
    d_out_p = _round_up(d_out, 128)
    lanes = max(d_h_p, d_out_p)

    w1p = jnp.pad(w1.astype(jnp.float32), ((0, d_in_p - d_in), (0, lanes - d_h)))
    w2p = jnp.pad(w2.astype(jnp.float32), ((0, d_h_p - d_h), (0, lanes - d_h)))
    w3p = jnp.pad(w3.astype(jnp.float32), ((0, d_h_p - d_h), (0, lanes - d_out)))
    w_slab = jnp.concatenate([w1p, w2p, w3p], axis=0)      # (d_in_p + 2*d_h_p, lanes)

    b_slab = jnp.zeros((8, lanes), jnp.float32)             # 8 sublanes (only 3 used)
    b_slab = b_slab.at[0, :d_h].set(b1.reshape(-1).astype(jnp.float32))
    b_slab = b_slab.at[1, :d_h].set(b2.reshape(-1).astype(jnp.float32))
    b_slab = b_slab.at[2, :d_out].set(b3.reshape(-1).astype(jnp.float32))

    dims = (d_in, d_out, d_in_p, d_h_p, d_out_p)
    return w_slab, b_slab, dims


@functools.partial(jax.jit, static_argnames=("dims", "block_b"))
def actor_forward(x, w_slab, b_slab, *, dims, block_b=128):
    d_in, d_out, d_in_p, d_h_p, d_out_p = dims
    B = x.shape[0]

    # Batch tile: up to 128 rows per grid step, multiple of 8 sublanes.
    tb = min(block_b, _round_up(B, 8))
    b_pad = _round_up(B, tb)
    xp = jnp.pad(x.astype(jnp.float32), ((0, b_pad - B), (0, d_in_p - d_in)))

    out = pl.pallas_call(
        functools.partial(actor_kernel, d_in=d_in_p, d_h=d_h_p, d_out=d_out_p),
        out_shape=jax.ShapeDtypeStruct((b_pad, d_out_p), jnp.float32),
        grid=(b_pad // tb,),
        in_specs=[
            pl.BlockSpec((tb, d_in_p), lambda i: (i, 0)),            # batch tile
            pl.BlockSpec(w_slab.shape, lambda i: (0, 0)),            # resident weights
            pl.BlockSpec(b_slab.shape, lambda i: (0, 0)),            # resident biases
        ],
        out_specs=pl.BlockSpec((tb, d_out_p), lambda i: (i, 0)),
        compiler_params=pltpu.CompilerParams(
            dimension_semantics=("parallel",),                       # v7x: split batch across TCs
        ),
    )(xp, w_slab, b_slab)

    return out[:B, :d_out]


def init_linear(key, in_dim, out_dim):
    # Matches torch.nn.Linear default init: U(-1/sqrt(in_dim), 1/sqrt(in_dim)).
    kw, kb = jax.random.split(key)
    bound = 1.0 / jnp.sqrt(jnp.float32(in_dim))
    w = jax.random.uniform(kw, (in_dim, out_dim), jnp.float32, -bound, bound)
    b = jax.random.uniform(kb, (1, out_dim), jnp.float32, -bound, bound)
    return w, b


if __name__ == "__main__":
    key = jax.random.PRNGKey(0)
    k_x, k1, k2, k3 = jax.random.split(key, 4)

    # Small but non-trivial: batch not a multiple of the 128-row tile, so the
    # grid (2 steps) and the batch/lane padding paths are both exercised.
    batch, input_dim, hidden_dim, output_dim = 200, 32, 64, 8

    x = jax.random.normal(k_x, (batch, input_dim), jnp.float32)
    w1, b1 = init_linear(k1, input_dim, hidden_dim)
    w2, b2 = init_linear(k2, hidden_dim, hidden_dim)
    w3, b3 = init_linear(k3, hidden_dim, output_dim)

    w_slab, b_slab, dims = pack_params(w1, b1, w2, b2, w3, b3)

    out = actor_forward(x, w_slab, b_slab, dims=dims, block_b=128)
    jax.block_until_ready(out)

    # Pure-JAX reference of the same forward semantics (unpadded weights).
    h = jnp.maximum(x @ w1 + b1, 0.0)
    h = jnp.maximum(h @ w2 + b2, 0.0)
    ref = jnp.tanh(h @ w3 + b3) * 3.0

    assert out.shape == (batch, output_dim)
    assert jnp.allclose(out, ref, atol=1e-5, rtol=1e-5)

    print("KERNEL_OK")
</pallas_src>

<mosaic_0001>
module attributes {stable_mosaic.version = 11 : i64} {
  func.func @actor_kernel(%arg0: i32, %arg1: memref<128x128xf32, #tpu.memory_space<vmem>>, %arg2: memref<384x128xf32, #tpu.memory_space<vmem>>, %arg3: memref<8x128xf32, #tpu.memory_space<vmem>>, %arg4: memref<128x128xf32, #tpu.memory_space<vmem>>) attributes {dimension_semantics = [#tpu.dimension_semantics<parallel>], iteration_bounds = array<i64: 2>, scalar_prefetch = 0 : i64, scratch_operands = 0 : i64, tpu.core_type = #tpu.core_type<tc>, window_params = [{transform_indices = @transform_0, window_bounds = array<i64: 128, 128>}, {pipeline_mode = #tpu.pipeline_mode<synchronous>, transform_indices = @transform_1, window_bounds = array<i64: 384, 128>}, {pipeline_mode = #tpu.pipeline_mode<synchronous>, transform_indices = @transform_2, window_bounds = array<i64: 8, 128>}, {transform_indices = @transform_3, window_bounds = array<i64: 128, 128>}]} {
    %c0 = arith.constant 0 : index
    %c0_0 = arith.constant 0 : index
    %0 = vector.load %arg1[%c0, %c0_0] : memref<128x128xf32, #tpu.memory_space<vmem>>, vector<128x128xf32>
    %c0_1 = arith.constant 0 : index
    %c0_2 = arith.constant 0 : index
    %1 = vector.load %arg2[%c0_1, %c0_2] : memref<384x128xf32, #tpu.memory_space<vmem>>, vector<128x128xf32>
    %c128 = arith.constant 128 : index
    %c0_3 = arith.constant 0 : index
    %2 = vector.load %arg2[%c128, %c0_3] : memref<384x128xf32, #tpu.memory_space<vmem>>, vector<128x128xf32>
    %c256 = arith.constant 256 : index
    %c0_4 = arith.constant 0 : index
    %3 = vector.load %arg2[%c256, %c0_4] : memref<384x128xf32, #tpu.memory_space<vmem>>, vector<128x128xf32>
    %c0_5 = arith.constant 0 : index
    %c0_6 = arith.constant 0 : index
    %4 = vector.load %arg3[%c0_5, %c0_6] : memref<8x128xf32, #tpu.memory_space<vmem>>, vector<1x128xf32>
    %c1 = arith.constant 1 : index
    %c0_7 = arith.constant 0 : index
    %5 = vector.load %arg3[%c1, %c0_7] : memref<8x128xf32, #tpu.memory_space<vmem>>, vector<1x128xf32>
    %c2 = arith.constant 2 : index
    %c0_8 = arith.constant 0 : index
    %6 = vector.load %arg3[%c2, %c0_8] : memref<8x128xf32, #tpu.memory_space<vmem>>, vector<1x128xf32>
    %cst = arith.constant dense<0.000000e+00> : vector<128x128xf32>
    %7 = tpu.matmul %0, %1, %cst {dimension_numbers = #tpu.dot_dimension_numbers<[1], [0], [0], [1], [0, 0, 1, 1], [], []>} : vector<128x128xf32>, vector<128x128xf32>, vector<128x128xf32> -> vector<128x128xf32>
    %8 = vector.broadcast %4 : vector<1x128xf32> to vector<128x128xf32>
    %9 = arith.addf %7, %8 : vector<128x128xf32>
    %cst_9 = arith.constant 0.000000e+00 : f32
    %10 = vector.broadcast %cst_9 : f32 to vector<128x128xf32>
    %11 = arith.maximumf %9, %10 : vector<128x128xf32>
    %cst_10 = arith.constant dense<0.000000e+00> : vector<128x128xf32>
    %12 = tpu.matmul %11, %2, %cst_10 {dimension_numbers = #tpu.dot_dimension_numbers<[1], [0], [0], [1], [0, 0, 1, 1], [], []>} : vector<128x128xf32>, vector<128x128xf32>, vector<128x128xf32> -> vector<128x128xf32>
    %13 = vector.broadcast %5 : vector<1x128xf32> to vector<128x128xf32>
    %14 = arith.addf %12, %13 : vector<128x128xf32>
    %cst_11 = arith.constant 0.000000e+00 : f32
    %15 = vector.broadcast %cst_11 : f32 to vector<128x128xf32>
    %16 = arith.maximumf %14, %15 : vector<128x128xf32>
    %cst_12 = arith.constant dense<0.000000e+00> : vector<128x128xf32>
    %17 = tpu.matmul %16, %3, %cst_12 {dimension_numbers = #tpu.dot_dimension_numbers<[1], [0], [0], [1], [0, 0, 1, 1], [], []>} : vector<128x128xf32>, vector<128x128xf32>, vector<128x128xf32> -> vector<128x128xf32>
    %18 = vector.broadcast %6 : vector<1x128xf32> to vector<128x128xf32>
    %19 = arith.addf %17, %18 : vector<128x128xf32>
    %20 = math.tanh %19 : vector<128x128xf32>
    %cst_13 = arith.constant 3.000000e+00 : f32
    %21 = vector.broadcast %cst_13 : f32 to vector<128x128xf32>
    %22 = arith.mulf %20, %21 : vector<128x128xf32>
    %c0_14 = arith.constant 0 : index
    %c0_15 = arith.constant 0 : index
    %23 = vector.load %arg4[%c0_14, %c0_15] : memref<128x128xf32, #tpu.memory_space<vmem>>, vector<128x128xf32>
    tpu.vector_store %arg4[%c0_14, %c0_15], %22 {strides = array<i32>} : memref<128x128xf32, #tpu.memory_space<vmem>>, vector<128x128xf32>,
    return
  }
  func.func @transform_0(%arg0: i32) -> (i32, i32) {
    %c0_i32 = arith.constant 0 : i32
    %c0_i32_0 = arith.constant 0 : i32
    return %arg0, %c0_i32 : i32, i32
  }
  func.func @transform_1(%arg0: i32) -> (i32, i32) {
    %c0_i32 = arith.constant 0 : i32
    %c0_i32_0 = arith.constant 0 : i32
    %c0_i32_1 = arith.constant 0 : i32
    return %c0_i32, %c0_i32_0 : i32, i32
  }
  func.func @transform_2(%arg0: i32) -> (i32, i32) {
    %c0_i32 = arith.constant 0 : i32
    %c0_i32_0 = arith.constant 0 : i32
    %c0_i32_1 = arith.constant 0 : i32
    return %c0_i32, %c0_i32_0 : i32, i32
  }
  func.func @transform_3(%arg0: i32) -> (i32, i32) {
    %c0_i32 = arith.constant 0 : i32
    %c0_i32_0 = arith.constant 0 : i32
    return %arg0, %c0_i32 : i32, i32
  }
}

</mosaic_0001>

<bundles_post_ra>
// kernel: actor_forward.1
= control target key start
LH: loop header
LB: loop body
LE: loop exit
PB: predicated region body
PF: predicated region fallthrough
CT: control target
= control target key end

     0   :  { %s1282_s12 = smov 0   ;;  %s1555_s0 = inlined_call_operand.vmem [shape: f32[256,128], index: 0, kind: input, shape index: {}]   ;;  %s1556_s1 = inlined_call_operand.vmem [shape: f32[384,128], index: 1, kind: input, shape index: {}]   ;;  %s1557_s2 = inlined_call_operand.vmem [shape: f32[8,128], index: 2, kind: input, shape index: {}]   ;;  %s1558_s3 = inlined_call_operand.vmem [shape: f32[256,128], index: 3, kind: output, shape index: {}]  }
   0x1 LB: > { %s824_s13 = sadd.s32 4294967295, %s1260_s12   ;;  %p828_p0 = scmp.ge.s32.totalorder %s1260_s12, 1  ;;  %s1260_s12 = sphi %s1282_s12, %s13_s12  }
   0x2   : > { %p138_p1 = scmp.lt.s32.totalorder %s1260_s12, 3 }
   0x4   : > { %p139_p2 = pnand %p828_p0, %p138_p1 }
   0x5   : > { %v190_v0 = vld [vmem:[%s1556_s1] sm:$0xff] (!%p139_p2)  ;;  %v191_v1 = vld [vmem:[%s1556_s1 + $0x8] sm:$0xff] (!%p139_p2)  ;;  %v192_v2 = vld [vmem:[%s1556_s1 + $0x10] sm:$0xff] (!%p139_p2)  ;;  %s829_s20 = sshll.u32 (!%p139_p2), %s824_s13, 4 }
   0x6   : > { %142 = sbr.rel (%p139_p2) target bundleno = 733 (0x2dd), region = 32  ;;  %v1102_v3 = vpack.c.bf16 (!%p139_p2), %v191_v1, %v190_v0  ;;  %v193_v4 = vld [vmem:[%s1556_s1 + $0x18] sm:$0xff] (!%p139_p2)  ;;  %p163_p3 = scmp.lt.s32.totalorder (!%p139_p2), %s829_s20, 31  ;;  %v194_v6 = vld [vmem:[%s1556_s1 + $0x20] sm:$0xff] (!%p139_p2)  ;;  %v195_v7 = vld [vmem:[%s1556_s1 + $0x28] sm:$0xff] (!%p139_p2) }
   0x7   : > { %v1106_v5 = vpack.c.bf16 (!%p139_p2), %v193_v4, %v192_v2  ;;  %v1110_v8 = vpack.c.bf16 (!%p139_p2), %v195_v7, %v194_v6  ;;  %v196_v9 = vld [vmem:[%s1556_s1 + $0x30] sm:$0xff] (!%p139_p2)  ;;  %v206_v10 = vld [vmem:[%s1556_s1 + $0x80] sm:$0xff] (!%p139_p2)  ;;  %v207_v11 = vld [vmem:[%s1556_s1 + $0x88] sm:$0xff] (!%p139_p2) }
   0x8   : > { %1103 = vmatprep.subr.bf16.mxu0 (!%p139_p2), %v1102_v3  ;;  %v197_v12 = vld [vmem:[%s1556_s1 + $0x38] sm:$0xff] (!%p139_p2)  ;;  %v1134_v13 = vpack.c.bf16 (!%p139_p2), %v207_v11, %v206_v10  ;;  %v208_v14 = vld [vmem:[%s1556_s1 + $0x90] sm:$0xff] (!%p139_p2)  ;;  %v198_v19 = vld [vmem:[%s1556_s1 + $0x40] sm:$0xff] (!%p139_p2) }
   0x9   : > { %1105 = vmatpush3.bf16.msra.mxu0 (!%p139_p2), %v1102_v3  ;;  %v209_v15 = vld [vmem:[%s1556_s1 + $0x98] sm:$0xff] (!%p139_p2)  ;;  %v1114_v18 = vpack.c.bf16 (!%p139_p2), %v197_v12, %v196_v9  ;;  %v199_v20 = vld [vmem:[%s1556_s1 + $0x48] sm:$0xff] (!%p139_p2)  ;;  %v210_v21 = vld [vmem:[%s1556_s1 + $0xa0] sm:$0xff] (!%p139_p2) }
   0xa   : > { %1107 = vmatprep.subr.bf16.mxu0 (!%p139_p2), %v1106_v5  ;;  %v1138_v17 = vpack.c.bf16 (!%p139_p2), %v209_v15, %v208_v14  ;;  %1135 = vmatprep.subr.bf16.mxu1 (!%p139_p2), %v1134_v13  ;;  %v211_v22 = vld [vmem:[%s1556_s1 + $0xa8] sm:$0xff] (!%p139_p2)  ;;  %v212_v23 = vld [vmem:[%s1556_s1 + $0xb0] sm:$0xff] (!%p139_p2)  ;;  %v1118_v24 = vpack.c.bf16 (!%p139_p2), %v199_v20, %v198_v19  ;;  %v213_v26 = vld [vmem:[%s1556_s1 + $0xb8] sm:$0xff] (!%p139_p2) }
   0xb   : > { %1137 = vmatpush3.bf16.msra.mxu1 (!%p139_p2), %v1134_v13  ;;  %v1142_v25 = vpack.c.bf16 (!%p139_p2), %v211_v22, %v210_v21  ;;  %v200_v27 = vld [vmem:[%s1556_s1 + $0x50] sm:$0xff] (!%p139_p2)  ;;  %v201_v28 = vld [vmem:[%s1556_s1 + $0x58] sm:$0xff] (!%p139_p2)  ;;  %v1146_v29 = vpack.c.bf16 (!%p139_p2), %v213_v26, %v212_v23  ;;  %v214_v30 = vld [vmem:[%s1556_s1 + $0xc0] sm:$0xff] (!%p139_p2) }
   0xc   : > { %1139 = vmatprep.subr.bf16.mxu1 (!%p139_p2), %v1138_v17  ;;  %v215_v31 = vld [vmem:[%s1556_s1 + $0xc8] sm:$0xff] (!%p139_p2)  ;;  %v1122_v32 = vpack.c.bf16 (!%p139_p2), %v201_v28, %v200_v27  ;;  %v202_v33 = vld [vmem:[%s1556_s1 + $0x60] sm:$0xff] (!%p139_p2)  ;;  %v216_v36 = vld [vmem:[%s1556_s1 + $0xd0] sm:$0xff] (!%p139_p2) }
   0xd   : > { %s1560_s20 = smov (!%p163_p3, %s829_s20), 31  ;;  %1109 = vmatpush3.bf16.msra.mxu0 %v1106_v5  ;;  %v203_v34 = vld [vmem:[%s1556_s1 + $0x68] sm:$0xff]  ;;  %v1150_v35 = vpack.c.bf16 %v215_v31, %v214_v30  ;;  %v217_v37 = vld [vmem:[%s1556_s1 + $0xd8] sm:$0xff]  ;;  %v204_v39 = vld [vmem:[%s1556_s1 + $0x70] sm:$0xff] }
   0xe   : > { %s830_s29 = sshll.u32 %s1560_s20, 3  ;;  %1111 = vmatprep.subr.bf16.mxu0 %v1110_v8  ;;  %v1126_v38 = vpack.c.bf16 %v203_v34, %v202_v33  ;;  %v205_v40 = vld [vmem:[%s1556_s1 + $0x78] sm:$0xff]  ;;  %v1154_v41 = vpack.c.bf16 %v217_v37, %v216_v36  ;;  %v218_v42 = vld [vmem:[%s1556_s1 + $0xe0] sm:$0xff]  ;;  %v219_v43 = vld [vmem:[%s1556_s1 + $0xe8] sm:$0xff] }
   0xf   : > { %s1328_s11 = scalar_lea.vmem %s1555_s0, %s830_s29  ;;  %1141 = vmatpush3.bf16.msra.mxu1 %v1138_v17  ;;  %v1130_v44 = vpack.c.bf16 %v205_v40, %v204_v39  ;;  %v1158_v45 = vpack.c.bf16 %v219_v43, %v218_v42  ;;  %v220_v61 = vld [vmem:[%s1556_s1 + $0xf0] sm:$0xff]  ;;  %v221_v62 = vld [vmem:[%s1556_s1 + $0xf8] sm:$0xff]  ;;  %v222_v0 = vld [vmem:[%s1556_s1 + $0x100] sm:$0xff]  ;;  %s1524_s27 = scalar_lea.vmem %s1558_s3, %s830_s29 }
  0x10   : > { %v174_v16 = vld [vmem:[%s1328_s11] sm:$0xff]  ;;  %1143 = vmatprep.subr.bf16.mxu1 %v1142_v25  ;;  %v175_v46 = vld [vmem:[%s1328_s11 + $0x8] sm:$0xff]  ;;  %v176_v47 = vld [vmem:[%s1328_s11 + $0x10] sm:$0xff]  ;;  %v1162_v63 = vpack.c.bf16 %v221_v62, %v220_v61 }
  0x11   : > { %966 = vmatprep.mubr.f32.mxu0 %v174_v16  ;;  %1113 = vmatpush3.bf16.msra.mxu0 %v1110_v8  ;;  %v177_v48 = vld [vmem:[%s1328_s11 + $0x18] sm:$0xff]  ;;  %v178_v49 = vld [vmem:[%s1328_s11 + $0x20] sm:$0xff]  ;;  %v179_v50 = vld [vmem:[%s1328_s11 + $0x28] sm:$0xff] }
  0x12   : > { %1115 = vmatprep.subr.bf16.mxu0 %v1114_v18  ;;  %v180_v51 = vld [vmem:[%s1328_s11 + $0x30] sm:$0xff]  ;;  %v181_v52 = vld [vmem:[%s1328_s11 + $0x38] sm:$0xff]  ;;  %v182_v53 = vld [vmem:[%s1328_s11 + $0x40] sm:$0xff] }
  0x13   : > { %1145 = vmatpush3.bf16.msra.mxu1 %v1142_v25  ;;  %v183_v54 = vld [vmem:[%s1328_s11 + $0x48] sm:$0xff]  ;;  %v184_v55 = vld [vmem:[%s1328_s11 + $0x50] sm:$0xff]  ;;  %v185_v56 = vld [vmem:[%s1328_s11 + $0x58] sm:$0xff] }
  0x14   : > { %1147 = vmatprep.subr.bf16.mxu1 %v1146_v29  ;;  %v186_v57 = vld [vmem:[%s1328_s11 + $0x60] sm:$0xff]  ;;  %v187_v58 = vld [vmem:[%s1328_s11 + $0x68] sm:$0xff]  ;;  %v188_v59 = vld [vmem:[%s1328_s11 + $0x70] sm:$0xff] }
  0x15   : > { %1117 = vmatpush3.bf16.msra.mxu0 %v1114_v18  ;;  %v189_v60 = vld [vmem:[%s1328_s11 + $0x78] sm:$0xff]  ;;  %v223_v1 = vld [vmem:[%s1556_s1 + $0x108] sm:$0xff]  ;;  %v224_v2 = vld [vmem:[%s1556_s1 + $0x110] sm:$0xff] }
  0x16   : > { %1119 = vmatprep.subr.bf16.mxu0 %v1118_v24  ;;  %v1166_v3 = vpack.c.bf16 %v223_v1, %v222_v0  ;;  %v225_v4 = vld [vmem:[%s1556_s1 + $0x118] sm:$0xff]  ;;  %v226_v6 = vld [vmem:[%s1556_s1 + $0x120] sm:$0xff]  ;;  %v227_v7 = vld [vmem:[%s1556_s1 + $0x128] sm:$0xff] }
  0x17   : > { %1149 = vmatpush3.bf16.msra.mxu1 %v1146_v29  ;;  %v1170_v5 = vpack.c.bf16 %v225_v4, %v224_v2  ;;  %v1174_v8 = vpack.c.bf16 %v227_v7, %v226_v6  ;;  %v228_v9 = vld [vmem:[%s1556_s1 + $0x130] sm:$0xff]  ;;  %v229_v10 = vld [vmem:[%s1556_s1 + $0x138] sm:$0xff]  ;;  %v230_v12 = vld [vmem:[%s1556_s1 + $0x140] sm:$0xff] }
  0x18   : > { %1151 = vmatprep.subr.bf16.mxu1 %v1150_v35  ;;  %v1436_v11 = vpack.c.bf16 %v229_v10, %v228_v9  ;;  %v231_v13 = vld [vmem:[%s1556_s1 + $0x148] sm:$0xff]  ;;  %v232_v15 = vld [vmem:[%s1556_s1 + $0x150] sm:$0xff]  ;;  %v233_v16 = vld [vmem:[%s1556_s1 + $0x158] sm:$0xff] }
  0x19   : > { %1121 = vmatpush3.bf16.msra.mxu0 %v1118_v24  ;;  %v1445_v14 = vpack.c.bf16 %v231_v13, %v230_v12  ;;  %v1455_v17 = vpack.c.bf16 %v233_v16, %v232_v15  ;;  %v234_v18 = vld [vmem:[%s1556_s1 + $0x160] sm:$0xff]  ;;  %v235_v19 = vld [vmem:[%s1556_s1 + $0x168] sm:$0xff]  ;;  %v236_v6 = vld [vmem:[%s1556_s1 + $0x170] sm:$0xff] }
  0x1a   : > { %1123 = vmatprep.subr.bf16.mxu0 %v1122_v32  ;;  %v1465_v20 = vpack.c.bf16 %v235_v19, %v234_v18  ;;  %v1473_v21 = vld [vmem:[%s1557_s2] ss:$0 sm:$0xff]  ;;  %v237_v7 = vld [vmem:[%s1556_s1 + $0x178] sm:$0xff]  ;;  %v834_v9 = vld [vmem:[%s1557_s2 + $0x1] ss:$0 sm:$0xff] }
  0x1b   : > { %1153 = vmatpush3.bf16.msra.mxu1 %v1150_v35 }
  0x1c   : > { %1155 = vmatprep.subr.bf16.mxu1 %v1154_v41 }
  0x1d   : > { %1125 = vmatpush3.bf16.msra.mxu0 %v1122_v32 }
  0x1e   : > { %1127 = vmatprep.subr.bf16.mxu0 %v1126_v38 }
  0x1f   : > { %1157 = vmatpush3.bf16.msra.mxu1 %v1154_v41 }
  0x20   : > { %1159 = vmatprep.subr.bf16.mxu1 %v1158_v45 }
  0x21   : > { %1129 = vmatpush3.bf16.msra.mxu0 %v1126_v38 }
  0x22   : > { %1131 = vmatprep.subr.bf16.mxu0 %v1130_v44 }
  0x23   : > { %1161 = vmatpush3.bf16.msra.mxu1 %v1158_v45 }
  0x24   : > { %1163 = vmatprep.subr.bf16.mxu1 %v1162_v63 }
  0x25   : > { %1133 = vmatpush3.bf16.msra.mxu0 %v1130_v44 }
  0x26   : > { %1167 = vmatprep.subr.bf16.mxu0 %v1166_v3 }
  0x27   : > { %1165 = vmatpush3.bf16.msra.mxu1 %v1162_v63 }
  0x28   : > { %967 = vmatmul.mubr.f32.vlgmr.msra.gmra.mrb[0].mxu0 %v175_v46  ;;  %1198 = vmatprep.subr.bf16.mxu1 %v1166_v3 }
  0x29   : > { %969 = vmatprep.mubr.f32.mxu0 %v176_v47  ;;  %1169 = vmatpush3.bf16.msra.mxu0 %v1166_v3 }
  0x2a   : > { %1171 = vmatprep.subr.bf16.mxu0 %v1170_v5 }
  0x2c   : > { %970 = vmatmul.mubr.f32.gmra.mrb[2].mxu0 %v177_v48 }
  0x2d   : > { %972 = vmatprep.mubr.f32.mxu0 %v178_v49  ;;  %1173 = vmatpush3.bf16.msra.mxu0 %v1170_v5 }
  0x2e   : > { %1175 = vmatprep.subr.bf16.mxu0 %v1174_v8 }
  0x30   : > { %973 = vmatmul.mubr.f32.gmra.mrb[4].mxu0 %v179_v50 }
  0x31   : > { %975 = vmatprep.mubr.f32.mxu0 %v180_v51  ;;  %1177 = vmatpush3.bf16.msra.mxu0 %v1174_v8 }
  0x32   : > { %1179 = vmatprep.subr.bf16.mxu0 %v1436_v11 }
  0x34   : > { %976 = vmatmul.mubr.f32.gmra.mrb[6].mxu0 %v181_v52 }
  0x35   : > { %978 = vmatprep.mubr.f32.mxu0 %v182_v53  ;;  %1181 = vmatpush3.bf16.msra.mxu0 %v1436_v11 }
  0x36   : > { %1183 = vmatprep.subr.bf16.mxu0 %v1445_v14 }
  0x38   : > { %979 = vmatmul.mubr.f32.gmra.mrb[8].mxu0 %v183_v54 }
  0x39   : > { %981 = vmatprep.mubr.f32.mxu0 %v184_v55  ;;  %1185 = vmatpush3.bf16.msra.mxu0 %v1445_v14 }
  0x3a   : > { %1187 = vmatprep.subr.bf16.mxu0 %v1455_v17 }
  0x3c   : > { %982 = vmatmul.mubr.f32.gmra.mrb[10].mxu0 %v185_v56 }
  0x3d   : > { %984 = vmatprep.mubr.f32.mxu0 %v186_v57  ;;  %1189 = vmatpush3.bf16.msra.mxu0 %v1455_v17 }
  0x3e   : > { %1191 = vmatprep.subr.bf16.mxu0 %v1465_v20 }
  0x40   : > { %985 = vmatmul.mubr.f32.gmra.mrb[12].mxu0 %v187_v58 }
  0x41   : > { %987 = vmatprep.mubr.f32.mxu0 %v188_v59  ;;  %1193 = vmatpush3.bf16.msra.mxu0 %v1465_v20 }
  0x44   : > { %988 = vmatmul.mubr.f32.gmra.mrb[14].mxu0 %v189_v60 }
  0xfb   : > { %v968_v22 = vpop.f32.mrb[0].mxu0 }
  0xfc   : > { %v317_v23 = vadd.f32 %v968_v22, %v1473_v21  ;;  %v311_v24 = vpop.f32.mrb[1].mxu0 }
  0xfd   : > { %v312_v25 = vadd.f32 %v1473_v21, %v311_v24 }
  0xfe   : > { %v391_v28 = vmax.f32 %v317_v23, 0.0 }
  0xff   : > { %v971_v26 = vpop.f32.mrb[2].mxu0  ;;  %v390_v27 = vmax.f32 %v312_v25, 0.0 }
 0x100   : > { %v327_v29 = vadd.f32 %v971_v26, %v1473_v21  ;;  %v321_v30 = vpop.f32.mrb[3].mxu0 }
 0x101   : > { %v322_v31 = vadd.f32 %v1473_v21, %v321_v30  ;;  %1022 = vmatprep.mubr.f32.mxu1 %v390_v27 }
 0x102   : > { %1023 = vmatmul.mubr.f32.vlgmr.msra.gmra.mrb[0].mxu1 %v391_v28  ;;  %v393_v34 = vmax.f32 %v327_v29, 0.0 }
 0x103   : > { %v392_v32 = vmax.f32 %v322_v31, 0.0  ;;  %v974_v33 = vpop.f32.mrb[4].mxu0  ;;  %1206 = vmatpush3.bf16.msra.mxu1 %v1166_v3 }
 0x104   : > { %v337_v35 = vadd.f32 %v974_v33, %v1473_v21  ;;  %v331_v36 = vpop.f32.mrb[5].mxu0  ;;  %1199 = vmatprep.subr.bf16.mxu1 %v1170_v5 }
 0x105   : > { %v332_v37 = vadd.f32 %v1473_v21, %v331_v36  ;;  %1025 = vmatprep.mubr.f32.mxu1 %v392_v32 }
 0x106   : > { %1026 = vmatmul.mubr.f32.gmra.mrb[2].mxu1 %v393_v34  ;;  %v395_v40 = vmax.f32 %v337_v35, 0.0 }
 0x107   : > { %v394_v38 = vmax.f32 %v332_v37, 0.0  ;;  %v977_v39 = vpop.f32.mrb[6].mxu0  ;;  %1207 = vmatpush3.bf16.msra.mxu1 %v1170_v5 }
 0x108   : > { %v347_v41 = vadd.f32 %v977_v39, %v1473_v21  ;;  %v341_v42 = vpop.f32.mrb[7].mxu0  ;;  %1200 = vmatprep.subr.bf16.mxu1 %v1174_v8 }
 0x109   : > { %v342_v43 = vadd.f32 %v1473_v21, %v341_v42  ;;  %1028 = vmatprep.mubr.f32.mxu1 %v394_v38 }
 0x10a   : > { %1029 = vmatmul.mubr.f32.gmra.mrb[4].mxu1 %v395_v40  ;;  %v397_v46 = vmax.f32 %v347_v41, 0.0 }
 0x10b   : > { %v396_v44 = vmax.f32 %v342_v43, 0.0  ;;  %v980_v45 = vpop.f32.mrb[8].mxu0  ;;  %1208 = vmatpush3.bf16.msra.mxu1 %v1174_v8  ;;  %v1194_v8 = vpack.c.bf16 %v237_v7, %v236_v6 }
 0x10c   : > { %v357_v47 = vadd.f32 %v980_v45, %v1473_v21  ;;  %v351_v48 = vpop.f32.mrb[9].mxu0  ;;  %1201 = vmatprep.subr.bf16.mxu1 %v1436_v11 }
 0x10d   : > { %v352_v49 = vadd.f32 %v1473_v21, %v351_v48  ;;  %1031 = vmatprep.mubr.f32.mxu1 %v396_v44  ;;  %1195 = vmatprep.subr.bf16.mxu0 %v1194_v8 }
 0x10e   : > { %1032 = vmatmul.mubr.f32.gmra.mrb[6].mxu1 %v397_v46  ;;  %v399_v52 = vmax.f32 %v357_v47, 0.0  ;;  %1197 = vmatpush3.bf16.msra.mxu0 %v1194_v8 }
 0x10f   : > { %v398_v50 = vmax.f32 %v352_v49, 0.0  ;;  %v983_v51 = vpop.f32.mrb[10].mxu0  ;;  %1209 = vmatpush3.bf16.msra.mxu1 %v1436_v11 }
 0x110   : > { %v367_v53 = vadd.f32 %v983_v51, %v1473_v21  ;;  %v361_v54 = vpop.f32.mrb[11].mxu0  ;;  %1202 = vmatprep.subr.bf16.mxu1 %v1445_v14 }
 0x111   : > { %v362_v55 = vadd.f32 %v1473_v21, %v361_v54  ;;  %1034 = vmatprep.mubr.f32.mxu1 %v398_v50 }
 0x112   : > { %1035 = vmatmul.mubr.f32.gmra.mrb[8].mxu1 %v399_v52  ;;  %v401_v58 = vmax.f32 %v367_v53, 0.0 }
 0x113   : > { %v400_v56 = vmax.f32 %v362_v55, 0.0  ;;  %v986_v57 = vpop.f32.mrb[12].mxu0  ;;  %1210 = vmatpush3.bf16.msra.mxu1 %v1445_v14 }
 0x114   : > { %v377_v59 = vadd.f32 %v986_v57, %v1473_v21  ;;  %v371_v60 = vpop.f32.mrb[13].mxu0  ;;  %1203 = vmatprep.subr.bf16.mxu1 %v1455_v17 }
 0x115   : > { %v372_v61 = vadd.f32 %v1473_v21, %v371_v60  ;;  %1037 = vmatprep.mubr.f32.mxu1 %v400_v56 }
 0x116   : > { %1038 = vmatmul.mubr.f32.gmra.mrb[10].mxu1 %v401_v58  ;;  %v403_v0 = vmax.f32 %v377_v59, 0.0  ;;  %v1511_v58 = vld [vmem:[%s1557_s2 + $0x2] ss:$0 sm:$0xff] }
 0x117   : > { %v402_v62 = vmax.f32 %v372_v61, 0.0  ;;  %v989_v63 = vpop.f32.mrb[14].mxu0  ;;  %1211 = vmatpush3.bf16.msra.mxu1 %v1455_v17 }
 0x118   : > { %v387_v1 = vadd.f32 %v989_v63, %v1473_v21  ;;  %v381_v2 = vpop.f32.mrb[15].mxu0  ;;  %1204 = vmatprep.subr.bf16.mxu1 %v1465_v20 }
 0x119   : > { %v382_v3 = vadd.f32 %v1473_v21, %v381_v2  ;;  %1040 = vmatprep.mubr.f32.mxu1 %v402_v62 }
 0x11a   : > { %1041 = vmatmul.mubr.f32.gmra.mrb[12].mxu1 %v403_v0  ;;  %v405_v5 = vmax.f32 %v387_v1, 0.0 }
 0x11b   : > { %v404_v4 = vmax.f32 %v382_v3, 0.0  ;;  %1212 = vmatpush3.bf16.msra.mxu1 %v1465_v20 }
 0x11c   : > { %1205 = vmatprep.subr.bf16.mxu1 %v1194_v8 }
 0x11d   : > { %1043 = vmatprep.mubr.f32.mxu1 %v404_v4 }
 0x11e   : > { %1044 = vmatmul.mubr.f32.gmra.mrb[14].mxu1 %v405_v5 }
 0x11f   : > { %1213 = vmatpush3.bf16.msra.mxu1 %v1194_v8 }
 0x1d5   : > { %v1024_v10 = vpop.f32.mrb[0].mxu1 }
 0x1d6   : > { %v482_v11 = vadd.f32 %v1024_v10, %v834_v9  ;;  %v476_v12 = vpop.f32.mrb[1].mxu1 }
 0x1d7   : > { %v477_v13 = vadd.f32 %v834_v9, %v476_v12 }
 0x1d8   : > { %v556_v16 = vmax.f32 %v482_v11, 0.0 }
 0x1d9   : > { %v555_v14 = vmax.f32 %v477_v13, 0.0  ;;  %v1027_v15 = vpop.f32.mrb[2].mxu1 }
 0x1da   : > { %v492_v17 = vadd.f32 %v1027_v15, %v834_v9  ;;  %v486_v18 = vpop.f32.mrb[3].mxu1 }
 0x1db   : > { %v487_v19 = vadd.f32 %v834_v9, %v486_v18  ;;  %1078 = vmatprep.mubr.f32.mxu0 %v555_v14 }
 0x1dc   : > { %1079 = vmatmul.mubr.f32.vlgmr.msra.gmra.mrb[16].mxu0 %v556_v16  ;;  %v558_v22 = vmax.f32 %v492_v17, 0.0 }
 0x1dd   : > { %v557_v20 = vmax.f32 %v487_v19, 0.0  ;;  %v1030_v21 = vpop.f32.mrb[4].mxu1 }
 0x1de   : > { %v502_v23 = vadd.f32 %v1030_v21, %v834_v9  ;;  %v496_v24 = vpop.f32.mrb[5].mxu1 }
 0x1df   : > { %v497_v25 = vadd.f32 %v834_v9, %v496_v24  ;;  %1081 = vmatprep.mubr.f32.mxu0 %v557_v20 }
 0x1e0   : > { %1082 = vmatmul.mubr.f32.gmra.mrb[18].mxu0 %v558_v22  ;;  %v560_v28 = vmax.f32 %v502_v23, 0.0 }
 0x1e1   : > { %v559_v26 = vmax.f32 %v497_v25, 0.0  ;;  %v1033_v27 = vpop.f32.mrb[6].mxu1 }
 0x1e2   : > { %v512_v29 = vadd.f32 %v1033_v27, %v834_v9  ;;  %v506_v30 = vpop.f32.mrb[7].mxu1 }
 0x1e3   : > { %v507_v31 = vadd.f32 %v834_v9, %v506_v30  ;;  %1084 = vmatprep.mubr.f32.mxu0 %v559_v26 }
 0x1e4   : > { %1085 = vmatmul.mubr.f32.gmra.mrb[20].mxu0 %v560_v28  ;;  %v562_v34 = vmax.f32 %v512_v29, 0.0 }
 0x1e5   : > { %v561_v32 = vmax.f32 %v507_v31, 0.0  ;;  %v1036_v33 = vpop.f32.mrb[8].mxu1 }
 0x1e6   : > { %v522_v35 = vadd.f32 %v1036_v33, %v834_v9  ;;  %v516_v36 = vpop.f32.mrb[9].mxu1 }
 0x1e7   : > { %v517_v37 = vadd.f32 %v834_v9, %v516_v36  ;;  %1087 = vmatprep.mubr.f32.mxu0 %v561_v32 }
 0x1e8   : > { %1088 = vmatmul.mubr.f32.gmra.mrb[22].mxu0 %v562_v34  ;;  %v564_v40 = vmax.f32 %v522_v35, 0.0 }
 0x1e9   : > { %v563_v38 = vmax.f32 %v517_v37, 0.0  ;;  %v1039_v39 = vpop.f32.mrb[10].mxu1 }
 0x1ea   : > { %v532_v41 = vadd.f32 %v1039_v39, %v834_v9  ;;  %v526_v42 = vpop.f32.mrb[11].mxu1 }
 0x1eb   : > { %v527_v43 = vadd.f32 %v834_v9, %v526_v42  ;;  %1090 = vmatprep.mubr.f32.mxu1 %v563_v38 }
 0x1ec   : > { %1091 = vmatmul.mubr.f32.vlgmr.msra.gmra.mrb[16].mxu1 %v564_v40  ;;  %v566_v46 = vmax.f32 %v532_v41, 0.0 }
 0x1ed   : > { %v565_v44 = vmax.f32 %v527_v43, 0.0  ;;  %v1042_v45 = vpop.f32.mrb[12].mxu1 }
 0x1ee   : > { %v542_v47 = vadd.f32 %v1042_v45, %v834_v9  ;;  %v536_v48 = vpop.f32.mrb[13].mxu1 }
 0x1ef   : > { %v537_v49 = vadd.f32 %v834_v9, %v536_v48  ;;  %1093 = vmatprep.mubr.f32.mxu1 %v565_v44 }
 0x1f0   : > { %1094 = vmatmul.mubr.f32.gmra.mrb[18].mxu1 %v566_v46  ;;  %v568_v52 = vmax.f32 %v542_v47, 0.0 }
 0x1f1   : > { %v567_v50 = vmax.f32 %v537_v49, 0.0  ;;  %v1045_v51 = vpop.f32.mrb[14].mxu1 }
 0x1f2   : > { %v552_v53 = vadd.f32 %v1045_v51, %v834_v9  ;;  %v546_v54 = vpop.f32.mrb[15].mxu1 }
 0x1f3   : > { %v547_v55 = vadd.f32 %v834_v9, %v546_v54  ;;  %1096 = vmatprep.mubr.f32.mxu1 %v567_v50 }
 0x1f4   : > { %1097 = vmatmul.mubr.f32.gmra.mrb[20].mxu1 %v568_v52  ;;  %v570_v57 = vmax.f32 %v552_v53, 0.0 }
 0x1f5   : > { %v569_v56 = vmax.f32 %v547_v55, 0.0 }
 0x1f7   : > { %1099 = vmatprep.mubr.f32.mxu1 %v569_v56 }
 0x1f8   : > { %1100 = vmatmul.mubr.f32.gmra.mrb[22].mxu1 %v570_v57 }
 0x2af   : > { %v1080_v59 = vpop.f32.mrb[16].mxu0 }
 0x2b0   : > { %v647_v60 = vadd.f32 %v1080_v59, %v1511_v58  ;;  %v641_v61 = vpop.f32.mrb[17].mxu0 }
 0x2b1   : > { %v642_v62 = vadd.f32 %v1511_v58, %v641_v61 }
 0x2b2   : > { %1222 = vtanh.f32 %v647_v60 }
 0x2b3   : > { %1224 = vtanh.f32 %v642_v62  ;;  %v1083_v63 = vpop.f32.mrb[18].mxu0 }
 0x2b4   : > { %v657_v0 = vadd.f32 %v1083_v63, %v1511_v58  ;;  %v651_v1 = vpop.f32.mrb[19].mxu0 }
 0x2b5   : > { %v652_v2 = vadd.f32 %v1511_v58, %v651_v1 }
 0x2b6   : > { %1226 = vtanh.f32 %v657_v0 }
 0x2b7   : > { %1228 = vtanh.f32 %v652_v2  ;;  %v1086_v3 = vpop.f32.mrb[20].mxu0 }
 0x2b8   : > { %v667_v4 = vadd.f32 %v1086_v3, %v1511_v58  ;;  %v661_v5 = vpop.f32.mrb[21].mxu0 }
 0x2b9   : > { %v662_v6 = vadd.f32 %v1511_v58, %v661_v5 }
 0x2ba   : > { %1230 = vtanh.f32 %v667_v4 }
 0x2bb   : > { %1232 = vtanh.f32 %v662_v6  ;;  %v1089_v7 = vpop.f32.mrb[22].mxu0 }
 0x2bc   : > { %v1223_v8 = vpop.eup %1222  ;;  %v677_v9 = vadd.f32 %v1089_v7, %v1511_v58  ;;  %v671_v10 = vpop.f32.mrb[23].mxu0 }
 0x2bd   : > { %v1225_v11 = vpop.eup %1224  ;;  %v737_v12 = vmul.f32 3.0, %v1223_v8  ;;  %v672_v13 = vadd.f32 %v1511_v58, %v671_v10 }
 0x2be   : > { %v736_v14 = vmul.f32 3.0, %v1225_v11  ;;  %1234 = vtanh.f32 %v677_v9 }
 0x2bf   : > { %753 = vst [vmem:[%s1524_s27 + $0x8] sm:$0xff] %v737_v12  ;;  %1236 = vtanh.f32 %v672_v13  ;;  %v1092_v15 = vpop.f32.mrb[16].mxu1 }
 0x2c0   : > { %v1227_v16 = vpop.eup %1226  ;;  %752 = vst [vmem:[%s1524_s27] sm:$0xff] %v736_v14  ;;  %v687_v17 = vadd.f32 %v1092_v15, %v1511_v58  ;;  %v681_v18 = vpop.f32.mrb[17].mxu1 }
 0x2c1   : > { %v1229_v19 = vpop.eup %1228  ;;  %v739_v20 = vmul.f32 3.0, %v1227_v16  ;;  %v682_v21 = vadd.f32 %v1511_v58, %v681_v18 }
 0x2c2   : > { %v738_v22 = vmul.f32 3.0, %v1229_v19  ;;  %1238 = vtanh.f32 %v687_v17 }
 0x2c3   : > { %755 = vst [vmem:[%s1524_s27 + $0x18] sm:$0xff] %v739_v20  ;;  %1240 = vtanh.f32 %v682_v21  ;;  %v1095_v23 = vpop.f32.mrb[18].mxu1 }
 0x2c4   : > { %v1231_v24 = vpop.eup %1230  ;;  %754 = vst [vmem:[%s1524_s27 + $0x10] sm:$0xff] %v738_v22  ;;  %v697_v25 = vadd.f32 %v1095_v23, %v1511_v58  ;;  %v691_v26 = vpop.f32.mrb[19].mxu1 }
 0x2c5   : > { %v1233_v27 = vpop.eup %1232  ;;  %v741_v28 = vmul.f32 3.0, %v1231_v24  ;;  %v692_v29 = vadd.f32 %v1511_v58, %v691_v26 }
 0x2c6   : > { %v740_v30 = vmul.f32 3.0, %v1233_v27  ;;  %1242 = vtanh.f32 %v697_v25 }
 0x2c7   : > { %757 = vst [vmem:[%s1524_s27 + $0x28] sm:$0xff] %v741_v28  ;;  %1244 = vtanh.f32 %v692_v29  ;;  %v1098_v31 = vpop.f32.mrb[20].mxu1 }
 0x2c8   : > { %v1235_v32 = vpop.eup %1234  ;;  %756 = vst [vmem:[%s1524_s27 + $0x20] sm:$0xff] %v740_v30  ;;  %v707_v33 = vadd.f32 %v1098_v31, %v1511_v58  ;;  %v701_v34 = vpop.f32.mrb[21].mxu1 }
 0x2c9   : > { %v1237_v35 = vpop.eup %1236  ;;  %v743_v36 = vmul.f32 3.0, %v1235_v32  ;;  %v702_v37 = vadd.f32 %v1511_v58, %v701_v34 }
 0x2ca   : > { %v742_v38 = vmul.f32 3.0, %v1237_v35  ;;  %1246 = vtanh.f32 %v707_v33 }
 0x2cb   : > { %759 = vst [vmem:[%s1524_s27 + $0x38] sm:$0xff] %v743_v36  ;;  %1248 = vtanh.f32 %v702_v37  ;;  %v1101_v39 = vpop.f32.mrb[22].mxu1 }
 0x2cc   : > { %v1239_v40 = vpop.eup %1238  ;;  %758 = vst [vmem:[%s1524_s27 + $0x30] sm:$0xff] %v742_v38  ;;  %v717_v41 = vadd.f32 %v1101_v39, %v1511_v58  ;;  %v711_v42 = vpop.f32.mrb[23].mxu1 }
 0x2cd   : > { %v1241_v43 = vpop.eup %1240  ;;  %v745_v44 = vmul.f32 3.0, %v1239_v40  ;;  %v712_v45 = vadd.f32 %v1511_v58, %v711_v42 }
 0x2ce   : > { %v744_v46 = vmul.f32 3.0, %v1241_v43  ;;  %1250 = vtanh.f32 %v717_v41 }
 0x2cf   : > { %761 = vst [vmem:[%s1524_s27 + $0x48] sm:$0xff] %v745_v44  ;;  %1252 = vtanh.f32 %v712_v45 }
 0x2d0   : > { %v1243_v47 = vpop.eup %1242  ;;  %760 = vst [vmem:[%s1524_s27 + $0x40] sm:$0xff] %v744_v46 }
 0x2d1   : > { %v1245_v48 = vpop.eup %1244  ;;  %v747_v49 = vmul.f32 3.0, %v1243_v47 }
 0x2d2   : > { %v746_v50 = vmul.f32 3.0, %v1245_v48 }
 0x2d3   : > { %763 = vst [vmem:[%s1524_s27 + $0x58] sm:$0xff] %v747_v49 }
 0x2d4   : > { %v1247_v51 = vpop.eup %1246  ;;  %762 = vst [vmem:[%s1524_s27 + $0x50] sm:$0xff] %v746_v50 }
 0x2d5   : > { %v1249_v52 = vpop.eup %1248  ;;  %v749_v53 = vmul.f32 3.0, %v1247_v51 }
 0x2d6   : > { %v748_v54 = vmul.f32 3.0, %v1249_v52 }
 0x2d7   : > { %765 = vst [vmem:[%s1524_s27 + $0x68] sm:$0xff] %v749_v53 }
 0x2d8   : > { %v1251_v55 = vpop.eup %1250  ;;  %764 = vst [vmem:[%s1524_s27 + $0x60] sm:$0xff] %v748_v54 }
 0x2d9   : > { %v1253_v56 = vpop.eup %1252  ;;  %v751_v57 = vmul.f32 3.0, %v1251_v55 }
 0x2da   : > { %v750_v58 = vmul.f32 3.0, %v1253_v56 }
 0x2db   : > { %767 = vst [vmem:[%s1524_s27 + $0x78] sm:$0xff] %v751_v57 }
 0x2dc   : > { %766 = vst [vmem:[%s1524_s27 + $0x70] sm:$0xff] %v750_v58 }
 0x2dd PF: > { %s13_s12 = sadd.s32 1, %s1260_s12  }
 0x2de   : > { %p10_p4 = scmp.ge.s32.totalorder %s13_s12, 4  }
 0x2e0   :  { %12 = sbr.rel (!%p10_p4) target bundleno = 1 (0x1), region = 62 }

</bundles_post_ra>
